<compile_context>
chip_gen: v7x
topology: tpu7x:2x2x1
jax: 0.10.0
libtpu: 0.0.40
codegen_flags: <defaults>
</compile_context>

<pallas_src>
import functools
import math

import jax
import jax.numpy as jnp
from jax.experimental import pallas as pl
from jax.experimental.pallas import tpu as pltpu


# Operand dtype fed to the MXU inside the aggregation kernel.  Setting this to
# jnp.bfloat16 on v6e/v7x gives ~3x matmul throughput (accumulation stays f32
# via preferred_element_type) at the cost of exact f32-vs-torch parity; the
# default keeps f32 operands.  The score kernel always stays f32 so the top-k
# selection is unaffected.
MXU_DTYPE = jnp.float32


def _mxu_dot(a, b, dims=None):
    a = a.astype(MXU_DTYPE)
    b = b.astype(MXU_DTYPE)
    if dims is None:
        return jnp.dot(a, b, preferred_element_type=jnp.float32)
    return jax.lax.dot_general(a, b, dims, preferred_element_type=jnp.float32)


# ----------------------------------------------------------------------------- helpers
def _erf(z):
    # float32-accurate erf (rational erfc approximation, max abs err ~1.2e-7)
    # built only from ops with guaranteed Mosaic lowerings.
    az = jnp.abs(z)
    t = 1.0 / (1.0 + 0.5 * az)
    poly = t * jnp.exp(
        -az * az
        - 1.26551223
        + t * (1.00002368
        + t * (0.37409196
        + t * (0.09678418
        + t * (-0.18628806
        + t * (0.27886807
        + t * (-1.13520398
        + t * (1.48851587
        + t * (-0.82215223
        + t * 0.17087277)))))))))
    return jnp.where(z >= 0.0, 1.0 - poly, poly - 1.0)


def _gelu_exact(x):
    # matches torch.nn.GELU() default (erf form)
    return 0.5 * x * (1.0 + _erf(x * 0.7071067811865476))


def _l2_normalize(x, axis=-1, eps=1e-12):
    # matches F.normalize(x, dim=axis): x / max(||x||_2, eps)
    n = jnp.sqrt(jnp.sum(x * x, axis=axis, keepdims=True))
    return x / jnp.maximum(n, eps)


def _choose_bblk(B, L, C, Hp, Kp1, vmem_budget_bytes=12 << 20):
    """How many images each grid step processes.

    * amortizes the ~0.35us/step overhead and grows the MXU M dimension,
    * stays under a conservative VMEM budget so it fits v5e's 16 MiB scoped
      default and v7x's smaller 64 MiB physical VMEM without raising
      vmem_limit_bytes (double-buffered input/output blocks + temporaries),
    * keeps the grid length >= 2 whenever B >= 2 so dimension_semantics=
      ("parallel",) can still shard the grid across v7x's two TensorCores.
    """
    bytes_per_img = 4 * (2 * L * C          # double-buffered img block
                         + 2 * Kp1 * C      # double-buffered out block
                         + 2 * L * C        # centred / normalized temporaries
                         + L * Hp           # hidden activations
                         + 8 * L)           # mask / score rows, logits
    cap = max(1, int(vmem_budget_bytes // max(bytes_per_img, 1)))
    best = 1
    for d in range(1, B + 1):
        if B % d != 0 or d > cap:
            continue
        if B >= 2 and B // d < 2:           # keep >= 2 grid steps for 2-TC chips
            continue
        best = d
    return best


# ----------------------------------------------------------------------------- kernel 1
def _score_kernel(img_ref, cap_glo_ref, score_ref):
    bblk = img_ref.shape[0]
    dims = (((1,), (1,)), ((), ()))                      # contract C: A @ B^T
    g_cap = cap_glo_ref[...]                             # (1, C)
    for b in range(bblk):                                # small, unrolled
        x = img_ref[b]                                   # (L, C)
        gm = jnp.mean(x, axis=0, keepdims=True)          # (1, C) global image token
        gn = _l2_normalize(gm, axis=-1)
        g = gn + g_cap                                   # (1, C): self + caption global

        # score = (g . x_row) / max(||x_row||, 1e-12); both factors lane-dense
        # (1, L) via MXU dots; division replaced by a clamped rsqrt multiply
        # (EUP) -- min(rsqrt(sq), 1e12) == 1/max(sqrt(sq), 1e-12) for sq >= 0.
        num = jax.lax.dot_general(g, x, dims, preferred_element_type=jnp.float32)
        sq = jax.lax.dot_general(jnp.ones_like(g), x * x, dims,
                                 preferred_element_type=jnp.float32)
        score_ref[b] = num * jnp.minimum(jax.lax.rsqrt(sq), jnp.float32(1e12))


def compute_scores(img_embs, cap_glo_norm, bblk):
    B, L, C = img_embs.shape
    return pl.pallas_call(
        _score_kernel,
        out_shape=jax.ShapeDtypeStruct((B, 1, L), jnp.float32),   # lane-dense rows
        grid=(B // bblk,),
        in_specs=[
            pl.BlockSpec((bblk, L, C), lambda b: (b, 0, 0)),
            pl.BlockSpec((1, C), lambda b: (0, 0)),
        ],
        out_specs=pl.BlockSpec((bblk, 1, L), lambda b: (b, 0, 0)),
        compiler_params=pltpu.CompilerParams(dimension_semantics=("parallel",)),
    )(img_embs, cap_glo_norm)


# ----------------------------------------------------------------------------- kernel 2
def _aggr_kernel(x_ref, mask_ref, score_ref,
                 ln_w_ref, ln_b_ref, w1_ref, b1_ref, w2t_ref, b2t_ref,
                 out_ref):
    bblk, L, C = x_ref.shape
    Kp1 = w2t_ref.shape[0]

    # --- per-token LayerNorm -> Linear -> GELU, flattened over the image
    # sub-batch so the MXU M dimension is bblk*L (bigger, fewer dots).
    x_flat = x_ref[...].reshape(bblk * L, C)
    mu = jnp.mean(x_flat, axis=-1, keepdims=True)
    xc = x_flat - mu
    var = jnp.mean(xc * xc, axis=-1, keepdims=True)      # biased var, torch semantics
    xn = xc * jax.lax.rsqrt(var + 1e-5)
    xn = xn * ln_w_ref[...] + ln_b_ref[...]
    h = _mxu_dot(xn, w1_ref[...]) + b1_ref[...]          # (bblk*L, Hp)
    h = _gelu_exact(h)

    neg = jnp.float32(-1e30)
    w2t = w2t_ref[...]                                   # (Kp1, Hp), pre-transposed
    b2t = b2t_ref[...]                                   # (Kp1, 1)
    dims = (((1,), (1,)), ((), ()))                      # contract Hp: A @ B^T

    for b in range(bblk):                                # small, unrolled
        h_b = h[b * L:(b + 1) * L, :]                    # (L, Hp), static sublane slice
        # Logits produced directly in (Kp1, L) orientation: no XLU transpose of a
        # partially-filled (L, 50) tile; the A@B^T contraction is MXU-native.
        logits = _mxu_dot(w2t, h_b, dims) + b2t          # (Kp1, L)

        keep = mask_ref[b] > 0.5                         # (1, L) True = kept token
        score = score_ref[b]                             # (1, L) sparse-selection score

        # Rows [0, K): aggregation logits with non-kept tokens masked; row K:
        # the score with KEPT tokens masked (extra token).  exp(-1e30 - m) is
        # exactly 0 in f32, so masking == the reference's gather-then-softmax.
        agg = jnp.where(keep, logits, neg)               # (Kp1, L)
        ext = jnp.where(keep, neg, score)                # (1, L)
        row = jax.lax.broadcasted_iota(jnp.int32, (Kp1, L), 0)
        full = jnp.where(row < Kp1 - 1, agg, ext)

        m = jnp.max(full, axis=-1, keepdims=True)
        p = jnp.exp(full - m)
        p = p * pl.reciprocal(jnp.sum(p, axis=-1, keepdims=True), approx=True)

        # [TokenAggregation bmm ; extra token] in one MXU matmul per image.
        x_b = x_flat[b * L:(b + 1) * L, :]               # (L, C)
        out_ref[b] = _mxu_dot(p, x_b)                    # (Kp1, C)


def prepare_aggr_params(params):
    """Fold scale into the second Linear, pre-transpose it to (K+1, Hp), zero-pad
    the hidden dim to a lane multiple, and append one zero row (slot for the
    extra-token logits row, which is overwritten in-kernel).  All transformations
    are mathematically exact (GELU(0)=0, zero rows/cols).  Call ONCE per
    parameter set, outside the per-forward path."""
    s = params["scale"][0, 0]
    w1, b1 = params["w1"], params["b1"]
    w2, b2 = params["w2"] * s, params["b2"] * s          # (H, K), (1, K)
    C, H = w1.shape
    Hp = ((H + 127) // 128) * 128
    return dict(
        ln_w=params["ln_w"], ln_b=params["ln_b"],
        w1=jnp.pad(w1, ((0, 0), (0, Hp - H))),
        b1=jnp.pad(b1, ((0, 0), (0, Hp - H))),
        w2t=jnp.pad(w2.T, ((0, 1), (0, Hp - H))),        # (K+1, Hp)
        b2t=jnp.pad(b2.T, ((0, 1), (0, 0))),             # (K+1, 1)
    )


def aggregate(img_embs, keep_mask, scores, prep, bblk):
    B, L, C = img_embs.shape
    Hp = prep["w1"].shape[1]
    Kp1 = prep["w2t"].shape[0]
    return pl.pallas_call(
        _aggr_kernel,
        out_shape=jax.ShapeDtypeStruct((B, Kp1, C), jnp.float32),
        grid=(B // bblk,),
        in_specs=[
            pl.BlockSpec((bblk, L, C), lambda b: (b, 0, 0)),
            pl.BlockSpec((bblk, 1, L), lambda b: (b, 0, 0)),
            pl.BlockSpec((bblk, 1, L), lambda b: (b, 0, 0)),
            pl.BlockSpec((1, C), lambda b: (0, 0)),
            pl.BlockSpec((1, C), lambda b: (0, 0)),
            pl.BlockSpec((C, Hp), lambda b: (0, 0)),
            pl.BlockSpec((1, Hp), lambda b: (0, 0)),
            pl.BlockSpec((Kp1, Hp), lambda b: (0, 0)),
            pl.BlockSpec((Kp1, 1), lambda b: (0, 0)),
        ],
        out_specs=pl.BlockSpec((bblk, Kp1, C), lambda b: (b, 0, 0)),
        compiler_params=pltpu.CompilerParams(dimension_semantics=("parallel",)),
    )(img_embs, keep_mask, scores,
      prep["ln_w"], prep["ln_b"], prep["w1"], prep["b1"], prep["w2t"], prep["b2t"])


# ----------------------------------------------------------------------------- forward
def cross_sparse_aggr_forward(img_embs, cap_embs, prep, *, sparse_ratio):
    B_v, L_v, C = img_embs.shape
    B_t = cap_embs.shape[0]
    num_keep = min(math.ceil(L_v * sparse_ratio), L_v)
    # TODO(synk): sparse_ratio >= 1.0 (no non-kept tokens) makes the reference's
    # extra-token softmax empty; this implementation assumes num_keep < L_v.

    Hp = prep["w1"].shape[1]
    Kp1 = prep["w2t"].shape[0]
    bblk = _choose_bblk(B_v, L_v, C, Hp, Kp1)

    # Only the final caption's result is returned by the reference forward.
    cap_last = cap_embs[B_t - 1]
    cap_glo = _l2_normalize(jnp.mean(cap_last, axis=0, keepdims=True), axis=-1)  # (1, C)

    # attention_x + attention_y (Pallas, lane-dense (B, 1, L))
    scores = compute_scores(img_embs, cap_glo, bblk)
    score = scores[:, 0, :]                                          # (B, L)

    # TokenSparse top-k -> keep mask.  Vectorized compare-reduce one-hot instead
    # of a serialized XLA scatter on the critical path between the two kernels.
    _, keep_idx = jax.lax.top_k(score, num_keep)
    iota = jnp.arange(L_v, dtype=keep_idx.dtype)
    keep_mask = (keep_idx[:, :, None] == iota[None, None, :]).any(axis=1)
    keep_mask = keep_mask.astype(jnp.float32)                        # (B, L)

    return aggregate(img_embs, keep_mask[:, None, :], scores, prep, bblk)  # (B, K+1, C)


def init_params(key, C, keeped_patches, dim_ratio=0.2):
    H = int(C * dim_ratio)
    k1, k2, k3, k4 = jax.random.split(key, 4)
    return dict(
        ln_w=jnp.ones((1, C), jnp.float32),
        ln_b=jnp.zeros((1, C), jnp.float32),
        w1=jax.random.normal(k1, (C, H), jnp.float32) * 0.02,
        b1=jax.random.normal(k2, (1, H), jnp.float32) * 0.02,
        w2=jax.random.normal(k3, (H, keeped_patches), jnp.float32) * 0.02,
        b2=jax.random.normal(k4, (1, keeped_patches), jnp.float32) * 0.02,
        scale=jnp.ones((1, 1), jnp.float32),                         # nn.Parameter(ones(1,1,1))
    )


if __name__ == "__main__":
    embed_size = 128
    sparse_ratio = 0.5
    aggr_ratio = 0.25
    num_patches = 392                                                # hardcoded in the module
    keeped_patches = int(num_patches * aggr_ratio * sparse_ratio)    # = 49

    B_v, L_v = 2, 16
    B_t, L_t = 2, 8

    key = jax.random.PRNGKey(0)
    k_img, k_cap, k_par = jax.random.split(key, 3)
    img_embs = jax.random.normal(k_img, (B_v, L_v, embed_size), jnp.float32)
    cap_embs = jax.random.normal(k_cap, (B_t, L_t, embed_size), jnp.float32)
    params = init_params(k_par, embed_size, keeped_patches)

    # Parameter prep (pad / fold / transpose) hoisted out of the forward path.
    prep = prepare_aggr_params(params)

    fwd = jax.jit(functools.partial(cross_sparse_aggr_forward, sparse_ratio=sparse_ratio))
    out = fwd(img_embs, cap_embs, prep)
    out = jax.block_until_ready(out)
    assert out.shape == (B_v, keeped_patches + 1, embed_size)
    assert out.dtype == jnp.float32
    print("KERNEL_OK")
</pallas_src>

<mosaic_0001>
module attributes {stable_mosaic.version = 11 : i64} {
  func.func @_score_kernel(%arg0: i32, %arg1: memref<1x16x128xf32, #tpu.memory_space<vmem>>, %arg2: memref<1x128xf32, #tpu.memory_space<vmem>>, %arg3: memref<1x1x16xf32, #tpu.memory_space<vmem>>) attributes {dimension_semantics = [#tpu.dimension_semantics<parallel>], iteration_bounds = array<i64: 2>, scalar_prefetch = 0 : i64, scratch_operands = 0 : i64, tpu.core_type = #tpu.core_type<tc>, window_params = [{transform_indices = @transform_0, window_bounds = array<i64: 1, 16, 128>}, {pipeline_mode = #tpu.pipeline_mode<synchronous>, transform_indices = @transform_1, window_bounds = array<i64: 1, 128>}, {transform_indices = @transform_2, window_bounds = array<i64: 1, 1, 16>}]} {
    %c0 = arith.constant 0 : index
    %c0_0 = arith.constant 0 : index
    %0 = vector.load %arg2[%c0, %c0_0] : memref<1x128xf32, #tpu.memory_space<vmem>>, vector<1x128xf32>
    %c0_1 = arith.constant 0 : index
    %c0_2 = arith.constant 0 : index
    %c0_3 = arith.constant 0 : index
    %1 = vector.load %arg1[%c0_1, %c0_2, %c0_3] : memref<1x16x128xf32, #tpu.memory_space<vmem>>, vector<1x16x128xf32>
    %2 = vector.shape_cast %1 : vector<1x16x128xf32> to vector<16x128xf32>
    %cst = arith.constant dense<0.000000e+00> : vector<128xf32>
    %3 = vector.multi_reduction <add>, %2, %cst [0] : vector<16x128xf32> to vector<128xf32>
    %4 = vector.shape_cast %3 : vector<128xf32> to vector<1x128xf32>
    %cst_4 = arith.constant 1.600000e+01 : f32
    %5 = vector.broadcast %cst_4 : f32 to vector<1x128xf32>
    %6 = arith.divf %4, %5 : vector<1x128xf32>
    %7 = arith.mulf %6, %6 : vector<1x128xf32>
    %cst_5 = arith.constant dense<0.000000e+00> : vector<1xf32>
    %8 = vector.multi_reduction <add>, %7, %cst_5 [1] : vector<1x128xf32> to vector<1xf32>
    %9 = vector.shape_cast %8 : vector<1xf32> to vector<1x1xf32>
    %10 = math.sqrt %9 : vector<1x1xf32>
    %cst_6 = arith.constant 9.99999996E-13 : f32
    %11 = vector.broadcast %cst_6 : f32 to vector<1x1xf32>
    %12 = arith.maximumf %10, %11 : vector<1x1xf32>
    %13 = vector.broadcast %12 : vector<1x1xf32> to vector<1x128xf32>
    %14 = arith.divf %6, %13 : vector<1x128xf32>
    %15 = arith.addf %14, %0 : vector<1x128xf32>
    %cst_7 = arith.constant dense<0.000000e+00> : vector<1x16xf32>
    %16 = tpu.matmul %15, %2, %cst_7 {dimension_numbers = #tpu.dot_dimension_numbers<[1], [1], [0], [0], [0, 0, 1, 0], [], []>} : vector<1x128xf32>, vector<16x128xf32>, vector<1x16xf32> -> vector<1x16xf32>
    %cst_8 = arith.constant 1.000000e+00 : f32
    %17 = vector.broadcast %cst_8 : f32 to vector<1x128xf32>
    %18 = arith.mulf %2, %2 : vector<16x128xf32>
    %cst_9 = arith.constant dense<0.000000e+00> : vector<1x16xf32>
    %19 = tpu.matmul %17, %18, %cst_9 {dimension_numbers = #tpu.dot_dimension_numbers<[1], [1], [0], [0], [0, 0, 1, 0], [], []>} : vector<1x128xf32>, vector<16x128xf32>, vector<1x16xf32> -> vector<1x16xf32>
    %20 = math.rsqrt %19 : vector<1x16xf32>
    %cst_10 = arith.constant 9.99999995E+11 : f32
    %21 = vector.broadcast %cst_10 : f32 to vector<1x16xf32>
    %22 = arith.minimumf %20, %21 : vector<1x16xf32>
    %23 = arith.mulf %16, %22 : vector<1x16xf32>
    %c0_11 = arith.constant 0 : index
    %c0_12 = arith.constant 0 : index
    %c0_13 = arith.constant 0 : index
    %24 = vector.load %arg3[%c0_11, %c0_12, %c0_13] : memref<1x1x16xf32, #tpu.memory_space<vmem>>, vector<1x1x16xf32>
    %25 = vector.shape_cast %24 : vector<1x1x16xf32> to vector<1x16xf32>
    %26 = vector.shape_cast %23 : vector<1x16xf32> to vector<1x1x16xf32>
    tpu.vector_store %arg3[%c0_11, %c0_12, %c0_13], %26 {strides = array<i32>} : memref<1x1x16xf32, #tpu.memory_space<vmem>>, vector<1x1x16xf32>,
    return
  }
  func.func @transform_0(%arg0: i32) -> (i32, i32, i32) {
    %c0_i32 = arith.constant 0 : i32
    %c0_i32_0 = arith.constant 0 : i32
    %c0_i32_1 = arith.constant 0 : i32
    return %arg0, %c0_i32, %c0_i32_0 : i32, i32, i32
  }
  func.func @transform_1(%arg0: i32) -> (i32, i32) {
    %c0_i32 = arith.constant 0 : i32
    %c0_i32_0 = arith.constant 0 : i32
    %c0_i32_1 = arith.constant 0 : i32
    return %c0_i32, %c0_i32_0 : i32, i32
  }
  func.func @transform_2(%arg0: i32) -> (i32, i32, i32) {
    %c0_i32 = arith.constant 0 : i32
    %c0_i32_0 = arith.constant 0 : i32
    %c0_i32_1 = arith.constant 0 : i32
    return %arg0, %c0_i32, %c0_i32_0 : i32, i32, i32
  }
}

module attributes {stable_mosaic.version = 11 : i64} {
  func.func @_aggr_kernel(%arg0: i32, %arg1: memref<1x16x128xf32, #tpu.memory_space<vmem>>, %arg2: memref<1x1x16xf32, #tpu.memory_space<vmem>>, %arg3: memref<1x1x16xf32, #tpu.memory_space<vmem>>, %arg4: memref<1x128xf32, #tpu.memory_space<vmem>>, %arg5: memref<1x128xf32, #tpu.memory_space<vmem>>, %arg6: memref<128x128xf32, #tpu.memory_space<vmem>>, %arg7: memref<1x128xf32, #tpu.memory_space<vmem>>, %arg8: memref<50x128xf32, #tpu.memory_space<vmem>>, %arg9: memref<50x1xf32, #tpu.memory_space<vmem>>, %arg10: memref<1x50x128xf32, #tpu.memory_space<vmem>>) attributes {dimension_semantics = [#tpu.dimension_semantics<parallel>], iteration_bounds = array<i64: 2>, scalar_prefetch = 0 : i64, scratch_operands = 0 : i64, tpu.core_type = #tpu.core_type<tc>, window_params = [{transform_indices = @transform_0, window_bounds = array<i64: 1, 16, 128>}, {transform_indices = @transform_1, window_bounds = array<i64: 1, 1, 16>}, {transform_indices = @transform_2, window_bounds = array<i64: 1, 1, 16>}, {pipeline_mode = #tpu.pipeline_mode<synchronous>, transform_indices = @transform_3, window_bounds = array<i64: 1, 128>}, {pipeline_mode = #tpu.pipeline_mode<synchronous>, transform_indices = @transform_4, window_bounds = array<i64: 1, 128>}, {pipeline_mode = #tpu.pipeline_mode<synchronous>, transform_indices = @transform_5, window_bounds = array<i64: 128, 128>}, {pipeline_mode = #tpu.pipeline_mode<synchronous>, transform_indices = @transform_6, window_bounds = array<i64: 1, 128>}, {pipeline_mode = #tpu.pipeline_mode<synchronous>, transform_indices = @transform_7, window_bounds = array<i64: 50, 128>}, {pipeline_mode = #tpu.pipeline_mode<synchronous>, transform_indices = @transform_8, window_bounds = array<i64: 50, 1>}, {transform_indices = @transform_9, window_bounds = array<i64: 1, 50, 128>}]} {
    %c0 = arith.constant 0 : index
    %c0_0 = arith.constant 0 : index
    %c0_1 = arith.constant 0 : index
    %0 = vector.load %arg1[%c0, %c0_0, %c0_1] : memref<1x16x128xf32, #tpu.memory_space<vmem>>, vector<1x16x128xf32>
    %1 = vector.shape_cast %0 : vector<1x16x128xf32> to vector<16x128xf32>
    %cst = arith.constant dense<0.000000e+00> : vector<16xf32>
    %2 = vector.multi_reduction <add>, %1, %cst [1] : vector<16x128xf32> to vector<16xf32>
    %3 = vector.shape_cast %2 : vector<16xf32> to vector<16x1xf32>
    %cst_2 = arith.constant 1.280000e+02 : f32
    %4 = vector.broadcast %cst_2 : f32 to vector<16x1xf32>
    %5 = arith.divf %3, %4 : vector<16x1xf32>
    %6 = vector.broadcast %5 : vector<16x1xf32> to vector<16x128xf32>
    %7 = arith.subf %1, %6 : vector<16x128xf32>
    %8 = arith.mulf %7, %7 : vector<16x128xf32>
    %cst_3 = arith.constant dense<0.000000e+00> : vector<16xf32>
    %9 = vector.multi_reduction <add>, %8, %cst_3 [1] : vector<16x128xf32> to vector<16xf32>
    %10 = vector.shape_cast %9 : vector<16xf32> to vector<16x1xf32>
    %cst_4 = arith.constant 1.280000e+02 : f32
    %11 = vector.broadcast %cst_4 : f32 to vector<16x1xf32>
    %12 = arith.divf %10, %11 : vector<16x1xf32>
    %cst_5 = arith.constant 9.99999974E-6 : f32
    %13 = vector.broadcast %cst_5 : f32 to vector<16x1xf32>
    %14 = arith.addf %12, %13 : vector<16x1xf32>
    %15 = math.rsqrt %14 : vector<16x1xf32>
    %16 = vector.broadcast %15 : vector<16x1xf32> to vector<16x128xf32>
    %17 = arith.mulf %7, %16 : vector<16x128xf32>
    %c0_6 = arith.constant 0 : index
    %c0_7 = arith.constant 0 : index
    %18 = vector.load %arg4[%c0_6, %c0_7] : memref<1x128xf32, #tpu.memory_space<vmem>>, vector<1x128xf32>
    %19 = vector.broadcast %18 : vector<1x128xf32> to vector<16x128xf32>
    %20 = arith.mulf %17, %19 : vector<16x128xf32>
    %c0_8 = arith.constant 0 : index
    %c0_9 = arith.constant 0 : index
    %21 = vector.load %arg5[%c0_8, %c0_9] : memref<1x128xf32, #tpu.memory_space<vmem>>, vector<1x128xf32>
    %22 = vector.broadcast %21 : vector<1x128xf32> to vector<16x128xf32>
    %23 = arith.addf %20, %22 : vector<16x128xf32>
    %c0_10 = arith.constant 0 : index
    %c0_11 = arith.constant 0 : index
    %24 = vector.load %arg6[%c0_10, %c0_11] : memref<128x128xf32, #tpu.memory_space<vmem>>, vector<128x128xf32>
    %cst_12 = arith.constant dense<0.000000e+00> : vector<16x128xf32>
    %25 = tpu.matmul %23, %24, %cst_12 {dimension_numbers = #tpu.dot_dimension_numbers<[1], [0], [0], [1], [0, 0, 1, 1], [], []>} : vector<16x128xf32>, vector<128x128xf32>, vector<16x128xf32> -> vector<16x128xf32>
    %c0_13 = arith.constant 0 : index
    %c0_14 = arith.constant 0 : index
    %26 = vector.load %arg7[%c0_13, %c0_14] : memref<1x128xf32, #tpu.memory_space<vmem>>, vector<1x128xf32>
    %27 = vector.broadcast %26 : vector<1x128xf32> to vector<16x128xf32>
    %28 = arith.addf %25, %27 : vector<16x128xf32>
    %cst_15 = arith.constant 5.000000e-01 : f32
    %29 = vector.broadcast %cst_15 : f32 to vector<16x128xf32>
    %30 = arith.mulf %29, %28 : vector<16x128xf32>
    %cst_16 = arith.constant 0.707106769 : f32
    %31 = vector.broadcast %cst_16 : f32 to vector<16x128xf32>
    %32 = arith.mulf %28, %31 : vector<16x128xf32>
    %33 = math.absf %32 : vector<16x128xf32>
    %cst_17 = arith.constant 5.000000e-01 : f32
    %34 = vector.broadcast %cst_17 : f32 to vector<16x128xf32>
    %35 = arith.mulf %34, %33 : vector<16x128xf32>
    %cst_18 = arith.constant 1.000000e+00 : f32
    %36 = vector.broadcast %cst_18 : f32 to vector<16x128xf32>
    %37 = arith.addf %36, %35 : vector<16x128xf32>
    %cst_19 = arith.constant 1.000000e+00 : f32
    %38 = vector.broadcast %cst_19 : f32 to vector<16x128xf32>
    %39 = arith.divf %38, %37 : vector<16x128xf32>
    %cst_20 = arith.constant 0.000000e+00 : f32
    %40 = vector.broadcast %cst_20 : f32 to vector<16x128xf32>
    %41 = arith.subf %40, %33 : vector<16x128xf32>
    %42 = arith.mulf %41, %33 : vector<16x128xf32>
    %cst_21 = arith.constant 1.26551223 : f32
    %43 = vector.broadcast %cst_21 : f32 to vector<16x128xf32>
    %44 = arith.subf %42, %43 : vector<16x128xf32>
    %cst_22 = arith.constant 0.170872763 : f32
    %45 = vector.broadcast %cst_22 : f32 to vector<16x128xf32>
    %46 = arith.mulf %39, %45 : vector<16x128xf32>
    %cst_23 = arith.constant -0.822152256 : f32
    %47 = vector.broadcast %cst_23 : f32 to vector<16x128xf32>
    %48 = arith.addf %47, %46 : vector<16x128xf32>
    %49 = arith.mulf %39, %48 : vector<16x128xf32>
    %cst_24 = arith.constant 1.48851585 : f32
    %50 = vector.broadcast %cst_24 : f32 to vector<16x128xf32>
    %51 = arith.addf %50, %49 : vector<16x128xf32>
    %52 = arith.mulf %39, %51 : vector<16x128xf32>
    %cst_25 = arith.constant -1.13520396 : f32
    %53 = vector.broadcast %cst_25 : f32 to vector<16x128xf32>
    %54 = arith.addf %53, %52 : vector<16x128xf32>
    %55 = arith.mulf %39, %54 : vector<16x128xf32>
    %cst_26 = arith.constant 0.278868079 : f32
    %56 = vector.broadcast %cst_26 : f32 to vector<16x128xf32>
    %57 = arith.addf %56, %55 : vector<16x128xf32>
    %58 = arith.mulf %39, %57 : vector<16x128xf32>
    %cst_27 = arith.constant -0.186288059 : f32
    %59 = vector.broadcast %cst_27 : f32 to vector<16x128xf32>
    %60 = arith.addf %59, %58 : vector<16x128xf32>
    %61 = arith.mulf %39, %60 : vector<16x128xf32>
    %cst_28 = arith.constant 0.0967841818 : f32
    %62 = vector.broadcast %cst_28 : f32 to vector<16x128xf32>
    %63 = arith.addf %62, %61 : vector<16x128xf32>
    %64 = arith.mulf %39, %63 : vector<16x128xf32>
    %cst_29 = arith.constant 0.374091953 : f32
    %65 = vector.broadcast %cst_29 : f32 to vector<16x128xf32>
    %66 = arith.addf %65, %64 : vector<16x128xf32>
    %67 = arith.mulf %39, %66 : vector<16x128xf32>
    %cst_30 = arith.constant 1.00002372 : f32
    %68 = vector.broadcast %cst_30 : f32 to vector<16x128xf32>
    %69 = arith.addf %68, %67 : vector<16x128xf32>
    %70 = arith.mulf %39, %69 : vector<16x128xf32>
    %71 = arith.addf %44, %70 : vector<16x128xf32>
    %72 = math.exp %71 : vector<16x128xf32>
    %73 = arith.mulf %39, %72 : vector<16x128xf32>
    %cst_31 = arith.constant 0.000000e+00 : f32
    %74 = vector.broadcast %cst_31 : f32 to vector<16x128xf32>
    %75 = arith.cmpf oge, %32, %74 : vector<16x128xf32>
    %cst_32 = arith.constant 1.000000e+00 : f32
    %76 = vector.broadcast %cst_32 : f32 to vector<16x128xf32>
    %77 = arith.subf %76, %73 : vector<16x128xf32>
    %cst_33 = arith.constant 1.000000e+00 : f32
    %78 = vector.broadcast %cst_33 : f32 to vector<16x128xf32>
    %79 = arith.subf %73, %78 : vector<16x128xf32>
    %80 = arith.select %75, %77, %79 : vector<16x128xi1>, vector<16x128xf32>
    %cst_34 = arith.constant 1.000000e+00 : f32
    %81 = vector.broadcast %cst_34 : f32 to vector<16x128xf32>
    %82 = arith.addf %81, %80 : vector<16x128xf32>
    %83 = arith.mulf %30, %82 : vector<16x128xf32>
    %c0_35 = arith.constant 0 : index
    %c0_36 = arith.constant 0 : index
    %84 = vector.load %arg8[%c0_35, %c0_36] : memref<50x128xf32, #tpu.memory_space<vmem>>, vector<50x128xf32>
    %c0_37 = arith.constant 0 : index
    %c0_38 = arith.constant 0 : index
    %85 = vector.load %arg9[%c0_37, %c0_38] : memref<50x1xf32, #tpu.memory_space<vmem>>, vector<50x1xf32>
    %cst_39 = arith.constant dense<0.000000e+00> : vector<50x16xf32>
    %86 = tpu.matmul %84, %83, %cst_39 {dimension_numbers = #tpu.dot_dimension_numbers<[1], [1], [0], [0], [0, 0, 1, 0], [], []>} : vector<50x128xf32>, vector<16x128xf32>, vector<50x16xf32> -> vector<50x16xf32>
    %87 = vector.broadcast %85 : vector<50x1xf32> to vector<50x16xf32>
    %88 = arith.addf %86, %87 : vector<50x16xf32>
    %c0_40 = arith.constant 0 : index
    %c0_41 = arith.constant 0 : index
    %c0_42 = arith.constant 0 : index
    %89 = vector.load %arg2[%c0_40, %c0_41, %c0_42] : memref<1x1x16xf32, #tpu.memory_space<vmem>>, vector<1x1x16xf32>
    %90 = vector.shape_cast %89 : vector<1x1x16xf32> to vector<1x16xf32>
    %cst_43 = arith.constant 5.000000e-01 : f32
    %91 = vector.broadcast %cst_43 : f32 to vector<1x16xf32>
    %92 = arith.cmpf ogt, %90, %91 : vector<1x16xf32>
    %c0_44 = arith.constant 0 : index
    %c0_45 = arith.constant 0 : index
    %c0_46 = arith.constant 0 : index
    %93 = vector.load %arg3[%c0_44, %c0_45, %c0_46] : memref<1x1x16xf32, #tpu.memory_space<vmem>>, vector<1x1x16xf32>
    %94 = vector.shape_cast %93 : vector<1x1x16xf32> to vector<1x16xf32>
    %cst_47 = arith.constant -1.000000e+30 : f32
    %95 = vector.shape_cast %92 : vector<1x16xi1> to vector<1x16xi1>
    %96 = vector.broadcast %95 : vector<1x16xi1> to vector<50x16xi1>
    %97 = vector.broadcast %cst_47 : f32 to vector<50x16xf32>
    %98 = arith.select %96, %88, %97 : vector<50x16xi1>, vector<50x16xf32>
    %cst_48 = arith.constant -1.000000e+30 : f32
    %99 = vector.broadcast %cst_48 : f32 to vector<1x16xf32>
    %100 = arith.select %92, %99, %94 : vector<1x16xi1>, vector<1x16xf32>
    %101 = tpu.iota {dimensions = array<i32: 0>} : vector<50x16xi32>
    %c49_i32 = arith.constant 49 : i32
    %102 = vector.broadcast %c49_i32 : i32 to vector<50x16xi32>
    %103 = arith.cmpi slt, %101, %102 : vector<50x16xi32>
    %104 = vector.shape_cast %100 : vector<1x16xf32> to vector<1x16xf32>
    %105 = vector.broadcast %104 : vector<1x16xf32> to vector<50x16xf32>
    %106 = arith.select %103, %98, %105 : vector<50x16xi1>, vector<50x16xf32>
    %cst_49 = arith.constant dense<0xFF800000> : vector<50xf32>
    %107 = vector.multi_reduction <maximumf>, %106, %cst_49 [1] : vector<50x16xf32> to vector<50xf32>
    %108 = vector.shape_cast %107 : vector<50xf32> to vector<50x1xf32>
    %109 = vector.broadcast %108 : vector<50x1xf32> to vector<50x16xf32>
    %110 = arith.subf %106, %109 : vector<50x16xf32>
    %111 = math.exp %110 : vector<50x16xf32>
    %cst_50 = arith.constant dense<0.000000e+00> : vector<50xf32>
    %112 = vector.multi_reduction <add>, %111, %cst_50 [1] : vector<50x16xf32> to vector<50xf32>
    %113 = vector.shape_cast %112 : vector<50xf32> to vector<50x1xf32>
    %114 = tpu.reciprocal %113 {approx = true} : vector<50x1xf32> -> vector<50x1xf32>
    %115 = vector.broadcast %114 : vector<50x1xf32> to vector<50x16xf32>
    %116 = arith.mulf %111, %115 : vector<50x16xf32>
    %cst_51 = arith.constant dense<0.000000e+00> : vector<50x128xf32>
    %117 = tpu.matmul %116, %1, %cst_51 {dimension_numbers = #tpu.dot_dimension_numbers<[1], [0], [0], [1], [0, 0, 1, 1], [], []>} : vector<50x16xf32>, vector<16x128xf32>, vector<50x128xf32> -> vector<50x128xf32>
    %c0_52 = arith.constant 0 : index
    %c0_53 = arith.constant 0 : index
    %c0_54 = arith.constant 0 : index
    %118 = vector.load %arg10[%c0_52, %c0_53, %c0_54] : memref<1x50x128xf32, #tpu.memory_space<vmem>>, vector<1x50x128xf32>
    %119 = vector.shape_cast %118 : vector<1x50x128xf32> to vector<50x128xf32>
    %120 = vector.shape_cast %117 : vector<50x128xf32> to vector<1x50x128xf32>
    tpu.vector_store %arg10[%c0_52, %c0_53, %c0_54], %120 {strides = array<i32>} : memref<1x50x128xf32, #tpu.memory_space<vmem>>, vector<1x50x128xf32>,
    return
  }
  func.func @transform_0(%arg0: i32) -> (i32, i32, i32) {
    %c0_i32 = arith.constant 0 : i32
    %c0_i32_0 = arith.constant 0 : i32
    %c0_i32_1 = arith.constant 0 : i32
    return %arg0, %c0_i32, %c0_i32_0 : i32, i32, i32
  }
  func.func @transform_1(%arg0: i32) -> (i32, i32, i32) {
    %c0_i32 = arith.constant 0 : i32
    %c0_i32_0 = arith.constant 0 : i32
    %c0_i32_1 = arith.constant 0 : i32
    return %arg0, %c0_i32, %c0_i32_0 : i32, i32, i32
  }
  func.func @transform_2(%arg0: i32) -> (i32, i32, i32) {
    %c0_i32 = arith.constant 0 : i32
    %c0_i32_0 = arith.constant 0 : i32
    %c0_i32_1 = arith.constant 0 : i32
    return %arg0, %c0_i32, %c0_i32_0 : i32, i32, i32
  }
  func.func @transform_3(%arg0: i32) -> (i32, i32) {
    %c0_i32 = arith.constant 0 : i32
    %c0_i32_0 = arith.constant 0 : i32
    %c0_i32_1 = arith.constant 0 : i32
    return %c0_i32, %c0_i32_0 : i32, i32
  }
  func.func @transform_4(%arg0: i32) -> (i32, i32) {
    %c0_i32 = arith.constant 0 : i32
    %c0_i32_0 = arith.constant 0 : i32
    %c0_i32_1 = arith.constant 0 : i32
    return %c0_i32, %c0_i32_0 : i32, i32
  }
  func.func @transform_5(%arg0: i32) -> (i32, i32) {
    %c0_i32 = arith.constant 0 : i32
    %c0_i32_0 = arith.constant 0 : i32
    %c0_i32_1 = arith.constant 0 : i32
    return %c0_i32, %c0_i32_0 : i32, i32
  }
  func.func @transform_6(%arg0: i32) -> (i32, i32) {
    %c0_i32 = arith.constant 0 : i32
    %c0_i32_0 = arith.constant 0 : i32
    %c0_i32_1 = arith.constant 0 : i32
    return %c0_i32, %c0_i32_0 : i32, i32
  }
  func.func @transform_7(%arg0: i32) -> (i32, i32) {
    %c0_i32 = arith.constant 0 : i32
    %c0_i32_0 = arith.constant 0 : i32
    %c0_i32_1 = arith.constant 0 : i32
    return %c0_i32, %c0_i32_0 : i32, i32
  }
  func.func @transform_8(%arg0: i32) -> (i32, i32) {
    %c0_i32 = arith.constant 0 : i32
    %c0_i32_0 = arith.constant 0 : i32
    %c0_i32_1 = arith.constant 0 : i32
    return %c0_i32, %c0_i32_0 : i32, i32
  }
  func.func @transform_9(%arg0: i32) -> (i32, i32, i32) {
    %c0_i32 = arith.constant 0 : i32
    %c0_i32_0 = arith.constant 0 : i32
    %c0_i32_1 = arith.constant 0 : i32
    return %arg0, %c0_i32, %c0_i32_0 : i32, i32, i32
  }
}

</mosaic_0001>

<bundles_post_ra>
// kernel: cross_sparse_aggr_forward.2
= control target key start
LH: loop header
LB: loop body
LE: loop exit
PB: predicated region body
PF: predicated region fallthrough
CT: control target
= control target key end

     0   :  { %s441_s9 = smov 0   ;;  %s465_s0 = inlined_call_operand.vmem [shape: f32[2,16,128], index: 0, kind: input, shape index: {}]   ;;  %s466_s1 = inlined_call_operand.vmem [shape: f32[1,128], index: 1, kind: input, shape index: {}]   ;;  %s467_s2 = inlined_call_operand.vmem [shape: f32[2,1,16], index: 2, kind: output, shape index: {}]  }
   0x1 LB: > { %s360_s10 = sadd.s32 4294967295, %s420_s9   ;;  %p364_p0 = scmp.ge.s32.totalorder %s420_s9, 1  ;;  %s420_s9 = sphi %s441_s9, %s12_s9  }
   0x2   : > { %p112_p1 = scmp.lt.s32.totalorder %s420_s9, 3 }
   0x4   : > { %p113_p2 = pnand %p364_p0, %p112_p1 }
   0x5   : > { %p132_p3 = scmp.lt.s32.totalorder (!%p113_p2), %s360_s10, 1  ;;  %v422_v14 = vmov (!%p113_p2), 0.0|0.0   ;;  %vm423_vm0 = vmmov (!%p113_p2), 0   ;;  %v424_v15 = vmov (!%p113_p2), 0.0   ;;  %v425_v17 = vmov (!%p113_p2), 1.0  }
   0x6   : > { %116 = sbr.rel (%p113_p2) target bundleno = 424 (0x1a8), region = 28  ;;  %393 = vmatprep.subr.bf16.mxu1 (!%p113_p2), %v422_v14  ;;  %390 = vmatprep.subr.bf16.mxu0 (!%p113_p2), %v422_v14  ;;  %v140_v26 = vld [vmem:[%s466_s1] sm:$0x1] (!%p113_p2)  ;;  %vm311_vm3 = vcmask (!%p113_p2), 122880  }
   0x7   : > { %387 = vmatprep.mubr.msk.f32.mxu1 (!%p113_p2), %vm423_vm0, %v424_v15  ;;  %380 = vmatprep.mubr.msk.f32.mxu0 (!%p113_p2), %vm423_vm0, %v424_v15 }
   0xd   : > { %s469_s10 = smov (!%p132_p3, %s360_s10), 1 }
   0xe   : > { %s369_s11 = sshll.u32 %s469_s10, 4  ;;  %s139_s19 = scalar_lea.vmem %s467_s2, %s469_s10 }
   0xf   : > { %s136_s14 = scalar_lea.vmem %s465_s0, %s369_s11 }
  0x10   : > { %v141_v0 = vld [vmem:[%s136_s14] sm:$0xff]  ;;  %v142_v1 = vld [vmem:[%s136_s14 + $0x8] sm:$0xff] }
  0x11   : > { %v143_v2 = vadd.f32 %v142_v1, %v141_v0  ;;  %v236_v11 = vmul.f32 %v141_v0, %v141_v0  ;;  %v237_v12 = vmul.f32 %v142_v1, %v142_v1  ;;  %v391_v16 = vpack.c.bf16 %v142_v1, %v141_v0 }
  0x13   : > { %v144_v3 = vrot.slane %v143_v2, 4  ;;  %v394_v13 = vpack.c.bf16 %v237_v12, %v236_v11  ;;  %392 = vmatpush3.bf16.xpose.msra.mxu0 %v391_v16 }
  0x15   : > { %v145_v4 = vadd.f32 %v144_v3, %v143_v2  ;;  %395 = vmatpush3.bf16.xpose.msra.mxu1 %v394_v13 }
  0x17   : > { %v146_v5 = vrot.slane %v145_v4, 2 }
  0x19   : > { %v147_v6 = vadd.f32 %v146_v5, %v145_v4 }
  0x1b   : > { %v148_v7 = vrot.slane %v147_v6, 1 }
  0x1c   : > { %388 = vmatmul.mubr.f32.vlgmr.msra.gmra.mrb[0].mxu1 %v425_v17 }
  0x1d   : > { %v149_v8 = vadd.f32 %v148_v7, %v147_v6 }
  0x1f   : > { %v151_v9 = vmul.f32 0.0625, %v149_v8 }
  0x21   : > { %v152_v10 = vmul.f32 %v151_v9, %v151_v9 }
  0x23   : > { %153 = vadd.xlane.f32.xlu0 %v152_v10 }
  0xb0   : > { %v154_v18 = vpop.xlane.xlu0 %153 }
  0xb1   : > { %408 = vrsqrt.f32 %v154_v18  ;;  %vm157_vm1 = vcmp.eq.f32.partialorder %v154_v18, inf  ;;  %v160_v21 = vand.u32 2147483648, %v154_v18  ;;  %vm159_vm2 = vcmp.eq.f32.partialorder %v154_v18, 0.0 }
  0xbb   : > { %v409_v19 = vpop.eup %408 }
  0xbc   : > { %v156_v20 = vmul.f32 %v409_v19, %v154_v18 }
  0xbe   : > { %v158_v22 = vsel %vm157_vm1, %v154_v18, %v156_v20 }
  0xbf   : > { %v161_v23 = vsel %vm159_vm2, %v160_v21, %v158_v22 }
  0xc0   : > { %v162_v24 = vmax.f32 %v161_v23, 1e-12 }
  0xc2   : > { %410 = vrcp.f32 %v162_v24 }
  0xcc   : > { %v411_v25 = vpop.eup %410 }
  0xcd   : > { %v164_v27 = vmul.f32 %v411_v25, %v151_v9 }
  0xcf   : > { %v165_v28 = vadd.f32 %v164_v27, %v140_v26 }
  0xd1   : > { %381 = vmatmul.mubr.f32.vlgmr.msra.gmra.mrb[0].mxu0 %v165_v28 }
  0xef   : > { %v304_v29 = vpop.f32.mrb[0].mxu1 }
  0xf0   : > { %v389_v30 = vpop.f32.mrb[1].mxu1  ;;  %412 = vrsqrt.f32 %v304_v29 }
  0xfa   : > { %v413_v31 = vpop.eup %412 }
  0xfb   : > { %v309_v32 = vmin.f32 %v413_v31, 1e+12 }
 0x1a4   : > { %v232_v33 = vpop.f32.mrb[0].mxu0 }
 0x1a5   : > { %v310_v34 = vmul.f32 %v309_v32, %v232_v33  ;;  %v382_v35 = vpop.f32.mrb[1].mxu0 }
 0x1a7   : > { %312 = vst.msk [vmem:[%s139_s19] sm:$0x1] %vm311_vm3, %v310_v34 }
 0x1a8 PF: > { %s12_s9 = sadd.s32 1, %s420_s9  }
 0x1a9   : > { %p9_p4 = scmp.ge.s32.totalorder %s12_s9, 4  }
 0x1ab   :  { %11 = sbr.rel (!%p9_p4) target bundleno = 1 (0x1), region = 58 }

// kernel: cross_sparse_aggr_forward.3
= control target key start
LH: loop header
LB: loop body
LE: loop exit
PB: predicated region body
PF: predicated region fallthrough
CT: control target
= control target key end

     0   :  { %s1353_s30 = smov 0   ;;  %s1575_s0 = inlined_call_operand.vmem [shape: f32[2,16,128], index: 0, kind: input, shape index: {}]   ;;  %s1576_s1 = inlined_call_operand.vmem [shape: f32[2,1,16], index: 1, kind: input, shape index: {}]   ;;  %s1577_s2 = inlined_call_operand.vmem [shape: f32[2,1,16], index: 2, kind: input, shape index: {}]   ;;  %s1578_s3 = inlined_call_operand.vmem [shape: f32[1,128], index: 3, kind: input, shape index: {}]   ;;  %s1579_s4 = inlined_call_operand.vmem [shape: f32[1,128], index: 4, kind: input, shape index: {}]   ;;  %s1580_s5 = inlined_call_operand.vmem [shape: f32[128,128], index: 5, kind: input, shape index: {}]   ;;  %s1581_s6 = inlined_call_operand.vmem [shape: f32[1,128], index: 6, kind: input, shape index: {}]   ;;  %s1582_s7 = inlined_call_operand.vmem [shape: f32[50,128], index: 7, kind: input, shape index: {}]   ;;  %s1583_s8 = inlined_call_operand.vmem [shape: f32[50,1], index: 8, kind: input, shape index: {}]   ;;  %s1584_s9 = inlined_call_operand.vmem [shape: f32[2,50,128], index: 9, kind: output, shape index: {}]  }
   0x1 LB: > { %s1050_s10 = sadd.s32 4294967295, %s1297_s30   ;;  %p1054_p0 = scmp.ge.s32.totalorder %s1297_s30, 1  ;;  %s1297_s30 = sphi %s1353_s30, %s19_s30  }
   0x2   : > { %p303_p1 = scmp.lt.s32.totalorder %s1297_s30, 3 }
   0x4   : > { %p304_p2 = pnand %p1054_p0, %p303_p1 }
   0x5   : > { %p345_p3 = scmp.lt.s32.totalorder (!%p304_p2), %s1050_s10, 1  ;;  %v404_v2 = vld [vmem:[%s1580_s5] sm:$0xff] (!%p304_p2)  ;;  %v405_v3 = vld [vmem:[%s1580_s5 + $0x8] sm:$0xff] (!%p304_p2)  ;;  %v406_v4 = vld [vmem:[%s1580_s5 + $0x10] sm:$0xff] (!%p304_p2)  ;;  %v1299_v51 = vmov (!%p304_p2), 0.0|0.0   ;;  %vm1300_vm0 = vmmov (!%p304_p2), 0  }
   0x6   : > { %307 = sbr.rel (%p304_p2) target bundleno = 1400 (0x578), region = 56  ;;  %v1196_v5 = vpack.c.bf16 (!%p304_p2), %v405_v3, %v404_v2  ;;  %v407_v6 = vld [vmem:[%s1580_s5 + $0x18] sm:$0xff] (!%p304_p2)  ;;  %v408_v16 = vld [vmem:[%s1580_s5 + $0x20] sm:$0xff] (!%p304_p2)  ;;  %v409_v17 = vld [vmem:[%s1580_s5 + $0x28] sm:$0xff] (!%p304_p2)  ;;  %1228 = vmatprep.subr.bf16.mxu1 (!%p304_p2), %v1299_v51  ;;  %v1301_v52 = vmov (!%p304_p2), 0.0   ;;  %v1302_v54 = vmov (!%p304_p2), 0  }
   0x7   : > { %v1200_v7 = vpack.c.bf16 (!%p304_p2), %v407_v6, %v406_v4  ;;  %v1204_v18 = vpack.c.bf16 (!%p304_p2), %v409_v17, %v408_v16  ;;  %v410_v19 = vld [vmem:[%s1580_s5 + $0x30] sm:$0xff] (!%p304_p2)  ;;  %v411_v20 = vld [vmem:[%s1580_s5 + $0x38] sm:$0xff] (!%p304_p2)  ;;  %v412_v22 = vld [vmem:[%s1580_s5 + $0x40] sm:$0xff] (!%p304_p2)  ;;  %1150 = vmatprep.mubr.msk.f32.mxu1 (!%p304_p2), %vm1300_vm0, %v1301_v52  ;;  %1250 = vset.pattern.permute.xlu1 (!%p304_p2), %v1302_v54  ;;  %vm770_vm5 = vcmask (!%p304_p2), 130048   ;;  %vm789_vm7 = vcmask (!%p304_p2), 123904  }
   0x8   : > { %1197 = vmatprep.subr.bf16.mxu0 (!%p304_p2), %v1196_v5  ;;  %v1208_v21 = vpack.c.bf16 (!%p304_p2), %v411_v20, %v410_v19  ;;  %v413_v23 = vld [vmem:[%s1580_s5 + $0x48] sm:$0xff] (!%p304_p2)  ;;  %v414_v25 = vld [vmem:[%s1580_s5 + $0x50] sm:$0xff] (!%p304_p2)  ;;  %v415_v26 = vld [vmem:[%s1580_s5 + $0x58] sm:$0xff] (!%p304_p2)  ;;  %1249 = vset.pattern.permute.xlu0 (!%p304_p2), %v1302_v54 }
   0x9   : > { %1199 = vmatpush3.bf16.msra.mxu0 (!%p304_p2), %v1196_v5  ;;  %v1212_v24 = vpack.c.bf16 (!%p304_p2), %v413_v23, %v412_v22  ;;  %v416_v27 = vld [vmem:[%s1580_s5 + $0x60] sm:$0xff] (!%p304_p2)  ;;  %v1216_v28 = vpack.c.bf16 (!%p304_p2), %v415_v26, %v414_v25  ;;  %v417_v29 = vld [vmem:[%s1580_s5 + $0x68] sm:$0xff] (!%p304_p2)  ;;  %v418_v31 = vld [vmem:[%s1580_s5 + $0x70] sm:$0xff] (!%p304_p2) }
   0xa   : > { %1201 = vmatprep.subr.bf16.mxu0 (!%p304_p2), %v1200_v7  ;;  %v1220_v30 = vpack.c.bf16 (!%p304_p2), %v417_v29, %v416_v27  ;;  %v419_v32 = vld [vmem:[%s1580_s5 + $0x78] sm:$0xff] (!%p304_p2)  ;;  %v1058_v41 = vld [vmem:[%s1578_s3] ss:$0 sm:$0xff] (!%p304_p2)  ;;  %v584_v53 = vld [vmem:[%s1583_s8 + $0x8] sm:$0xff] (!%p304_p2) }
   0xb   : > { %v1224_v33 = vpack.c.bf16 (!%p304_p2), %v419_v32, %v418_v31  ;;  %v1059_v43 = vld [vmem:[%s1579_s4] ss:$0 sm:$0xff] (!%p304_p2)  ;;  %v585_v57 = vld [vmem:[%s1583_s8 + $0x10] sm:$0xff] (!%p304_p2)  ;;  %v588_v58 = vld [vmem:[%s1583_s8 + $0x28] sm:$0xff] (!%p304_p2) }
   0xc   : > { %v583_v55 = vld [vmem:[%s1583_s8] sm:$0xff] (!%p304_p2)  ;;  %v589_v63 = vld [vmem:[%s1583_s8 + $0x30] sm:$0x3] (!%p304_p2)  ;;  %v586_v4 = vld [vmem:[%s1583_s8 + $0x18] sm:$0xff] (!%p304_p2) }
   0xd   : > { %s1586_s10 = smov (!%p345_p3, %s1050_s10), 1  ;;  %1203 = vmatpush3.bf16.msra.mxu0 %v1200_v7  ;;  %v587_v56 = vld [vmem:[%s1583_s8 + $0x20] sm:$0xff] }
   0xe   : > { %s1074_s11 = sshll.u32 %s1586_s10, 4  ;;  %1205 = vmatprep.subr.bf16.mxu0 %v1204_v18  ;;  %v1060_v59 = vld [vmem:[%s1581_s6] ss:$0 sm:$0xff]  ;;  %s352_s26 = scalar_lea.vmem %s1576_s1, %s1586_s10 }
   0xf   : > { %s349_s14 = scalar_lea.vmem %s1575_s0, %s1074_s11  ;;  %s355_s29 = scalar_lea.vmem %s1577_s2, %s1586_s10 }
  0x10   : > { %v1367_v0 = vld [vmem:[%s349_s14] sm:$0xff]  ;;  %v1370_v1 = vld [vmem:[%s349_s14 + $0x8] sm:$0xff]  ;;  %s1236_s11 = smul.u32 56, %s1586_s10 }
  0x11   : > { %363 = vadd.xlane.f32.xlu0 %v1367_v0  ;;  %1207 = vmatpush3.bf16.msra.mxu0 %v1204_v18  ;;  %v1431_v50 = vpack.c.bf16 %v1370_v1, %v1367_v0 }
  0x12   : > { %1209 = vmatprep.subr.bf16.mxu0 %v1208_v21  ;;  %s360_s14 = scalar_lea.vmem %s1584_s9, %s1236_s11 }
  0x15   : > { %365 = vadd.xlane.f32.xlu0 %v1370_v1  ;;  %1211 = vmatpush3.bf16.msra.mxu0 %v1208_v21 }
  0x16   : > { %1213 = vmatprep.subr.bf16.mxu0 %v1212_v24 }
  0x19   : > { %1215 = vmatpush3.bf16.msra.mxu0 %v1212_v24 }
  0x1a   : > { %1217 = vmatprep.subr.bf16.mxu0 %v1216_v28 }
  0x1d   : > { %1219 = vmatpush3.bf16.msra.mxu0 %v1216_v28 }
  0x1e   : > { %1221 = vmatprep.subr.bf16.mxu0 %v1220_v30 }
  0x21   : > { %1223 = vmatpush3.bf16.msra.mxu0 %v1220_v30 }
  0x22   : > { %1225 = vmatprep.subr.bf16.mxu0 %v1224_v33 }
  0x25   : > { %1227 = vmatpush3.bf16.msra.mxu0 %v1224_v33 }
  0x26   : > { %1231 = vmatprep.subr.bf16.mxu0 %v1299_v51 }
  0x2b   : > { %592 = vperm.xlu0 %1249, %v583_v55  }
  0x9e   : > { %v364_v8 = vpop.xlane.xlu0 %363 }
  0x9f   : > { %v368_v9 = vmul.f32 0.0078125, %v364_v8 }
  0xa1   : > { %v370_v10 = vsub.f32 %v1367_v0, %v368_v9 }
  0xa2   : > { %v366_v11 = vpop.xlane.xlu0 %365 }
  0xa3   : > { %v369_v12 = vmul.f32 0.0078125, %v366_v11  ;;  %v372_v13 = vmul.f32 %v370_v10, %v370_v10 }
  0xa5   : > { %v371_v14 = vsub.f32 %v1370_v1, %v369_v12  ;;  %374 = vadd.xlane.f32.xlu1 %v372_v13 }
  0xa7   : > { %v373_v15 = vmul.f32 %v371_v14, %v371_v14 }
  0xa9   : > { %376 = vadd.xlane.f32.xlu1 %v373_v15 }
  0xba   : > { %597 = vperm.xlu1 %1250, %v584_v53  }
  0xbe   : > { %612 = vperm.xlu1 %1250, %v587_v56  }
  0xc2   : > { %602 = vperm.xlu1 %1250, %v585_v57  }
  0xc6   : > { %617 = vperm.xlu1 %1250, %v588_v58  }
  0xca   : > { %622 = vperm.xlu1 %1250, %v589_v63  }
  0xce   : > { %607 = vperm.xlu1 %1250, %v586_v4  }
 0x132   : > { %v375_v34 = vpop.xlane.xlu1 %374 }
 0x133   : > { %v378_v35 = vmul.f32 0.0078125, %v375_v34 }
 0x135   : > { %v380_v36 = vadd.f32 1e-05, %v378_v35 }
 0x136   : > { %v377_v37 = vpop.xlane.xlu1 %376 }
 0x137   : > { %1251 = vrsqrt.f32 %v380_v36  ;;  %v379_v38 = vmul.f32 0.0078125, %v377_v37 }
 0x139   : > { %v381_v39 = vadd.f32 1e-05, %v379_v38 }
 0x13b   : > { %1253 = vrsqrt.f32 %v381_v39 }
 0x141   : > { %v1252_v40 = vpop.eup %1251 }
 0x142   : > { %v384_v42 = vmul.f32 %v1252_v40, %v370_v10 }
 0x144   : > { %v393_v44 = vmul.f32 %v1058_v41, %v384_v42 }
 0x145   : > { %v1254_v45 = vpop.eup %1253 }
 0x146   : > { %v385_v46 = vmul.f32 %v1254_v45, %v371_v14  ;;  %v402_v47 = vadd.f32 %v1059_v43, %v393_v44 }
 0x148   : > { %v394_v48 = vmul.f32 %v1058_v41, %v385_v46  ;;  %1143 = vmatprep.mubr.f32.mxu0 %v402_v47 }
 0x14a   : > { %v403_v49 = vadd.f32 %v1059_v43, %v394_v48 }
 0x14c   : > { %1144 = vmatmul.mubr.f32.vlgmr.msra.gmra.mrb[0].mxu0 %v403_v49 }
 0x14d   : > { %1233 = vmatpush3.bf16.msra.mxu0 %v1431_v50  ;;  %1175 = vmatprep.mubr.msk.f32.mxu0 %vm1300_vm0, %v1301_v52 }
 0x21f   : > { %v1145_v60 = vpop.f32.mrb[0].mxu0 }
 0x220   : > { %v1460_v61 = vadd.f32 %v1145_v60, %v1060_v59  ;;  %v493_v62 = vpop.f32.mrb[1].mxu0 }
 0x221   : > { %v1465_v0 = vadd.f32 %v1060_v59, %v493_v62 }
 0x222   : > { %v1468_v1 = vmul.f32 0.70710677, %v1460_v61 }
 0x223   : > { %v1471_v2 = vmul.f32 0.70710677, %v1465_v0 }
 0x224   : > { %v507_v3 = vand.u32 2147483647, %v1468_v1  ;;  %vm565_vm1 = vcmp.ge.f32.partialorder %v1468_v1, 0.0  ;;  %v576_v1 = vld [vmem:[%s1582_s7] sm:$0xff] }
 0x225   : > { %v506_v5 = vand.u32 2147483647, %v1471_v2  ;;  %vm564_vm2 = vcmp.ge.f32.partialorder %v1471_v2, 0.0  ;;  %v581_v2 = vld [vmem:[%s1582_s7 + $0x28] sm:$0xff] }
 0x226   : > { %v509_v6 = vmul.f32 0.5, %v507_v3  ;;  %v517_v36 = vsub.f32 0.0, %v507_v3 }
 0x227   : > { %v508_v7 = vmul.f32 0.5, %v506_v5  ;;  %v516_v38 = vsub.f32 0.0, %v506_v5 }
 0x228   : > { %v511_v8 = vadd.f32 1.0, %v509_v6  ;;  %v519_v42 = vmul.f32 %v517_v36, %v507_v3 }
 0x229   : > { %v510_v9 = vadd.f32 1.0, %v508_v7  ;;  %v518_v44 = vmul.f32 %v516_v38, %v506_v5 }
 0x22a   : > { %1255 = vrcp.f32 %v511_v8  ;;  %v1062_v48 = vadd.f32 -1.2655122, %v519_v42 }
 0x22b   : > { %1257 = vrcp.f32 %v510_v9  ;;  %v1061_v53 = vadd.f32 -1.2655122, %v518_v44  ;;  %v503_v9 = vmul.f32 0.5, %v1460_v61  ;;  %v577_v61 = vld [vmem:[%s1582_s7 + $0x8] sm:$0xff] }
 0x234   : > { %v1256_v10 = vpop.eup %1255 }
 0x235   : > { %v1258_v11 = vpop.eup %1257  ;;  %v523_v12 = vmul.f32 0.17087276, %v1256_v10 }
 0x236   : > { %v522_v13 = vmul.f32 0.17087276, %v1258_v11 }
 0x237   : > { %v525_v14 = vadd.f32 -0.82215226, %v523_v12 }
 0x238   : > { %v524_v15 = vadd.f32 -0.82215226, %v522_v13 }
 0x239   : > { %v527_v16 = vmul.f32 %v1256_v10, %v525_v14  ;;  %v502_v14 = vmul.f32 0.5, %v1465_v0  ;;  %v579_v0 = vld [vmem:[%s1582_s7 + $0x18] sm:$0xff] }
 0x23a   : > { %v526_v17 = vmul.f32 %v1258_v11, %v524_v15 }
 0x23b   : > { %v529_v18 = vadd.f32 1.4885159, %v527_v16 }
 0x23c   : > { %v528_v19 = vadd.f32 1.4885159, %v526_v17 }
 0x23d   : > { %v531_v20 = vmul.f32 %v1256_v10, %v529_v18  ;;  %v598_v18 = vpop.permute.xlu1 %597 }
 0x23e   : > { %v530_v21 = vmul.f32 %v1258_v11, %v528_v19  ;;  %v729_v19 = vlaneseq }
 0x23f   : > { %v533_v22 = vadd.f32 -1.135204, %v531_v20  ;;  %v725_v20 = vld [vmem:[%s352_s26] sm:$0x1] }
 0x240   : > { %v532_v23 = vadd.f32 -1.135204, %v530_v21  ;;  %v730_v21 = vshrl.u32 %v729_v19, 7  ;;  %vm726_vm3 = vcmp.gt.f32.partialorder %v725_v20, 0.5 }
 0x241   : > { %v535_v24 = vmul.f32 %v1256_v10, %v533_v22  ;;  %v613_v22 = vpop.permute.xlu1 %612 }
 0x242   : > { %v534_v25 = vmul.f32 %v1258_v11, %v532_v23  ;;  %v731_v23 = vsub.s32 0, %v730_v21 }
 0x243   : > { %v537_v26 = vadd.f32 0.27886808, %v535_v24  ;;  %v728_v24 = vsel %vm726_vm3, 1, %v1302_v54 }
 0x244   : > { %v536_v27 = vadd.f32 0.27886808, %v534_v25 }
 0x245   : > { %v539_v28 = vmul.f32 %v1256_v10, %v537_v26  ;;  %v603_v25 = vpop.permute.xlu1 %602  ;;  %v732_v26 = vrot.slane %v728_v24, %v731_v23 }
 0x246   : > { %v538_v29 = vmul.f32 %v1258_v11, %v536_v27  ;;  %v593_v27 = vpop.permute.xlu0 %592 }
 0x247   : > { %v541_v30 = vadd.f32 -0.18628806, %v539_v28  ;;  %vm733_vm4 = vcmp.eq.s32.totalorder %v732_v26, 1 }
 0x248   : > { %v540_v31 = vadd.f32 -0.18628806, %v538_v29 }
 0x249   : > { %v543_v32 = vmul.f32 %v1256_v10, %v541_v30  ;;  %v618_v28 = vpop.permute.xlu1 %617 }
 0x24a   : > { %v542_v33 = vmul.f32 %v1258_v11, %v540_v31 }
 0x24b   : > { %v545_v34 = vadd.f32 0.09678418, %v543_v32 }
 0x24c   : > { %v544_v35 = vadd.f32 0.09678418, %v542_v33 }
 0x24d   : > { %v547_v37 = vmul.f32 %v1256_v10, %v545_v34 }
 0x24e   : > { %v546_v39 = vmul.f32 %v1258_v11, %v544_v35 }
 0x24f   : > { %v549_v40 = vadd.f32 0.37409195, %v547_v37  ;;  %v623_v37 = vpop.permute.xlu1 %622 }
 0x250   : > { %v548_v41 = vadd.f32 0.37409195, %v546_v39 }
 0x251   : > { %v551_v43 = vmul.f32 %v1256_v10, %v549_v40 }
 0x252   : > { %v550_v45 = vmul.f32 %v1258_v11, %v548_v41 }
 0x253   : > { %v553_v46 = vadd.f32 1.0000237, %v551_v43  ;;  %v608_v43 = vpop.permute.xlu1 %607 }
 0x254   : > { %v552_v47 = vadd.f32 1.0000237, %v550_v45 }
 0x255   : > { %v555_v49 = vmul.f32 %v1256_v10, %v553_v46 }
 0x256   : > { %v554_v55 = vmul.f32 %v1258_v11, %v552_v47 }
 0x257   : > { %v557_v56 = vadd.f32 %v1062_v48, %v555_v49 }
 0x258   : > { %v556_v57 = vadd.f32 %v1061_v53, %v554_v55 }
 0x259   : > { %v560_v58 = vmul.f32 1.442695, %v557_v56 }
 0x25a   : > { %v558_v59 = vmul.f32 1.442695, %v556_v57  ;;  %v727_v57 = vld [vmem:[%s355_s29] sm:$0x1] }
 0x25b   : > { %1259 = vpow2.f32 %v560_v58 }
 0x25c   : > { %1261 = vpow2.f32 %v558_v59 }
 0x265   : > { %v1260_v60 = vpop.eup %1259 }
 0x266   : > { %v1262_v62 = vpop.eup %1261  ;;  %v563_v63 = vmul.f32 %v1260_v60, %v1256_v10 }
 0x267   : > { %v562_v4 = vmul.f32 %v1262_v62, %v1258_v11  ;;  %v582_v11 = vld [vmem:[%s1582_s7 + $0x30] sm:$0x3]  ;;  %v741_v62 = vsel %vm726_vm3, -1e+30, %v727_v57 }
 0x268   : > { %v567_v3 = vsub.f32 1.0, %v563_v63  ;;  %v1064_v6 = vadd.f32 -1.0, %v563_v63 }
 0x269   : > { %v566_v5 = vsub.f32 1.0, %v562_v4  ;;  %v1063_v7 = vadd.f32 -1.0, %v562_v4 }
 0x26a   : > { %v571_v8 = vsel %vm565_vm1, %v567_v3, %v1064_v6  ;;  %v749_v3 = vadd.s32 48, %v730_v21 }
 0x26b   : > { %v570_v12 = vsel %vm564_vm2, %v566_v5, %v1063_v7  ;;  %v573_v13 = vadd.f32 1.0, %v571_v8  ;;  %v761_v8 = vrot.slane %v741_v62, %v731_v23 }
 0x26c   : > { %v572_v15 = vadd.f32 1.0, %v570_v12  ;;  %vm756_vm6 = vcmp.lt.s32.totalorder %v749_v3, 49 }
 0x26d   : > { %v575_v16 = vmul.f32 %v573_v13, %v503_v9 }
 0x26e   : > { %v574_v17 = vmul.f32 %v572_v15, %v502_v14 }
 0x270   : > { %v1229_v10 = vpack.c.bf16 %v575_v16, %v574_v17 }
 0x272   : > { %1230 = vmatpush3.bf16.xpose.msra.mxu1 %v1229_v10 }
 0x273   : > { %1234 = vmatprep.subr.bf16.mxu1 %v1299_v51  ;;  %v578_v51 = vld [vmem:[%s1582_s7 + $0x10] sm:$0xff] }
 0x279   : > { %1151 = vmatmul.mubr.f32.vlgmr.msra.gmra.mrb[0].mxu1 %v576_v1 }
 0x27a   : > { %1153 = vmatprep.mubr.msk.f32.mxu1 %vm1300_vm0, %v1301_v52  ;;  %1235 = vmatpush3.bf16.msra.mxu1 %v1431_v50  ;;  %v580_v50 = vld [vmem:[%s1582_s7 + $0x20] sm:$0xff] }
 0x27d   : > { %1154 = vmatmul.mubr.f32.gmra.mrb[2].mxu1 %v577_v61 }
 0x27e   : > { %1156 = vmatprep.mubr.msk.f32.mxu1 %vm1300_vm0, %v1301_v52 }
 0x281   : > { %1157 = vmatmul.mubr.f32.gmra.mrb[4].mxu1 %v578_v51 }
 0x282   : > { %1159 = vmatprep.mubr.msk.f32.mxu1 %vm1300_vm0, %v1301_v52 }
 0x285   : > { %1160 = vmatmul.mubr.f32.gmra.mrb[6].mxu1 %v579_v0 }
 0x286   : > { %1162 = vmatprep.mubr.msk.f32.mxu1 %vm1300_vm0, %v1301_v52 }
 0x289   : > { %1163 = vmatmul.mubr.f32.gmra.mrb[8].mxu1 %v580_v50 }
 0x28a   : > { %1165 = vmatprep.mubr.msk.f32.mxu1 %vm1300_vm0, %v1301_v52 }
 0x28d   : > { %1166 = vmatmul.mubr.f32.gmra.mrb[10].mxu1 %v581_v2 }
 0x28e   : > { %1168 = vmatprep.mubr.msk.f32.mxu1 %vm1300_vm0, %v1301_v52 }
 0x291   : > { %1169 = vmatmul.mubr.f32.gmra.mrb[12].mxu1 %v582_v11 }
 0x292   : > { %1187 = vmatprep.mubr.msk.f32.mxu1 %vm1300_vm0, %v1301_v52 }
 0x34c   : > { %v691_v29 = vpop.f32.mrb[0].mxu1 }
 0x34d   : > { %v692_v30 = vadd.f32 %v691_v29, %v593_v27  ;;  %v1152_v31 = vpop.f32.mrb[1].mxu1 }
 0x34f   : > { %v734_v32 = vsel %vm733_vm4, %v692_v30, -1e+30 }
 0x350   : > { %v696_v33 = vpop.f32.mrb[2].mxu1  ;;  %v771_v34 = vsel %vm770_vm5, %v734_v32, -inf }
 0x351   : > { %v697_v35 = vadd.f32 %v696_v33, %v598_v18  ;;  %v1155_v36 = vpop.f32.mrb[3].mxu1  ;;  %772 = vmax.xlane.f32.xlu1 %v771_v34 }
 0x353   : > { %v735_v54 = vsel %vm733_vm4, %v697_v35, -1e+30 }
 0x354   : > { %v701_v38 = vpop.f32.mrb[4].mxu1  ;;  %v774_v39 = vsel %vm770_vm5, %v735_v54, -inf }
 0x355   : > { %v702_v40 = vadd.f32 %v701_v38, %v603_v25  ;;  %v1158_v41 = vpop.f32.mrb[5].mxu1  ;;  %775 = vmax.xlane.f32.xlu0 %v774_v39 }
 0x357   : > { %v736_v42 = vsel %vm733_vm4, %v702_v40, -1e+30 }
 0x358   : > { %v706_v44 = vpop.f32.mrb[6].mxu1  ;;  %v777_v45 = vsel %vm770_vm5, %v736_v42, -inf }
 0x359   : > { %v707_v46 = vadd.f32 %v706_v44, %v608_v43  ;;  %v1161_v47 = vpop.f32.mrb[7].mxu1  ;;  %778 = vmax.xlane.f32.xlu0 %v777_v45 }
 0x35b   : > { %v737_v48 = vsel %vm733_vm4, %v707_v46, -1e+30 }
 0x35c   : > { %v711_v49 = vpop.f32.mrb[8].mxu1  ;;  %v780_v53 = vsel %vm770_vm5, %v737_v48, -inf }
 0x35d   : > { %v712_v55 = vadd.f32 %v711_v49, %v613_v22  ;;  %v1164_v56 = vpop.f32.mrb[9].mxu1  ;;  %781 = vmax.xlane.f32.xlu0 %v780_v53 }
 0x35f   : > { %v738_v58 = vsel %vm733_vm4, %v712_v55, -1e+30 }
 0x360   : > { %v716_v59 = vpop.f32.mrb[10].mxu1  ;;  %v783_v60 = vsel %vm770_vm5, %v738_v58, -inf }
 0x361   : > { %v717_v63 = vadd.f32 %v716_v59, %v618_v28  ;;  %v1167_v4 = vpop.f32.mrb[11].mxu1  ;;  %784 = vmax.xlane.f32.xlu1 %v783_v60 }
 0x363   : > { %v739_v6 = vsel %vm733_vm4, %v717_v63, -1e+30 }
 0x364   : > { %v721_v5 = vpop.f32.mrb[12].mxu1  ;;  %v786_v7 = vsel %vm770_vm5, %v739_v6, -inf }
 0x365   : > { %v722_v9 = vadd.f32 %v721_v5, %v623_v37  ;;  %v1170_v12 = vpop.f32.mrb[13].mxu1  ;;  %787 = vmax.xlane.f32.xlu1 %v786_v7 }
 0x367   : > { %v740_v13 = vsel %vm733_vm4, %v722_v9, -1e+30 }
 0x368   : > { %v769_v14 = vsel %vm756_vm6, %v740_v13, %v761_v8 }
 0x369   : > { %v790_v15 = vsel %vm789_vm7, %v769_v14, -inf }
 0x36a   : > { %791 = vmax.xlane.f32.xlu1 %v790_v15 }
 0x3de   : > { %v773_v16 = vpop.xlane.xlu1 %772 }
 0x3df   : > { %v793_v17 = vsub.f32 %v734_v32, %v773_v16 }
 0x3e1   : > { %v800_v10 = vmul.f32 1.442695, %v793_v17 }
 0x3e2   : > { %v776_v1 = vpop.xlane.xlu0 %775 }
 0x3e3   : > { %1263 = vpow2.f32 %v800_v10  ;;  %v794_v61 = vsub.f32 %v735_v54, %v776_v1 }
 0x3e5   : > { %v802_v51 = vmul.f32 1.442695, %v794_v61 }
 0x3e6   : > { %v779_v0 = vpop.xlane.xlu0 %778 }
 0x3e7   : > { %1265 = vpow2.f32 %v802_v51  ;;  %v795_v50 = vsub.f32 %v736_v42, %v779_v0 }
 0x3e9   : > { %v804_v2 = vmul.f32 1.442695, %v795_v50 }
 0x3ea   : > { %v782_v11 = vpop.xlane.xlu0 %781 }
 0x3eb   : > { %1267 = vpow2.f32 %v804_v2  ;;  %v796_v18 = vsub.f32 %v737_v48, %v782_v11 }
 0x3ed   : > { %v1264_v19 = vpop.eup %1263  ;;  %v806_v20 = vmul.f32 1.442695, %v796_v18 }
 0x3ee   : > { %v785_v21 = vpop.xlane.xlu1 %784  ;;  %v814_v22 = vsel %vm770_vm5, %v1264_v19, 0.0 }
 0x3ef   : > { %1269 = vpow2.f32 %v806_v20  ;;  %v797_v23 = vsub.f32 %v738_v58, %v785_v21  ;;  %815 = vadd.xlane.f32.xlu0 %v814_v22 }
 0x3f1   : > { %v1266_v24 = vpop.eup %1265  ;;  %v808_v25 = vmul.f32 1.442695, %v797_v23 }
 0x3f2   : > { %v788_v26 = vpop.xlane.xlu1 %787  ;;  %v817_v27 = vsel %vm770_vm5, %v1266_v24, 0.0 }
 0x3f3   : > { %1271 = vpow2.f32 %v808_v25  ;;  %v798_v28 = vsub.f32 %v739_v6, %v788_v26  ;;  %818 = vadd.xlane.f32.xlu1 %v817_v27 }
 0x3f5   : > { %v1268_v29 = vpop.eup %1267  ;;  %v810_v30 = vmul.f32 1.442695, %v798_v28 }
 0x3f6   : > { %v820_v31 = vsel %vm770_vm5, %v1268_v29, 0.0 }
 0x3f7   : > { %1273 = vpow2.f32 %v810_v30  ;;  %v792_v32 = vpop.xlane.xlu1 %791  ;;  %821 = vadd.xlane.f32.xlu1 %v820_v31 }
 0x3f8   : > { %v799_v33 = vsub.f32 %v769_v14, %v792_v32 }
 0x3f9   : > { %v1270_v34 = vpop.eup %1269 }
 0x3fa   : > { %v812_v35 = vmul.f32 1.442695, %v799_v33  ;;  %v823_v36 = vsel %vm770_vm5, %v1270_v34, 0.0 }
 0x3fb   : > { %824 = vadd.xlane.f32.xlu1 %v823_v36 }
 0x3fc   : > { %1275 = vpow2.f32 %v812_v35 }
 0x3fd   : > { %v1272_v37 = vpop.eup %1271 }
 0x3fe   : > { %v826_v54 = vsel %vm770_vm5, %v1272_v37, 0.0 }
 0x3ff   : > { %827 = vadd.xlane.f32.xlu0 %v826_v54 }
 0x401   : > { %v1274_v38 = vpop.eup %1273 }
 0x402   : > { %v829_v39 = vsel %vm770_vm5, %v1274_v38, 0.0 }
 0x403   : > { %830 = vadd.xlane.f32.xlu0 %v829_v39 }
 0x406   : > { %v1276_v40 = vpop.eup %1275 }
 0x407   : > { %v832_v41 = vsel %vm789_vm7, %v1276_v40, 0.0 }
 0x408   : > { %833 = vadd.xlane.f32.xlu0 %v832_v41 }
 0x47c   : > { %v816_v42 = vpop.xlane.xlu0 %815 }
 0x47d   : > { %1277 = vrcp.f32 %v816_v42 }
 0x480   : > { %v819_v43 = vpop.xlane.xlu1 %818 }
 0x481   : > { %1279 = vrcp.f32 %v819_v43 }
 0x484   : > { %v822_v44 = vpop.xlane.xlu1 %821 }
 0x485   : > { %1281 = vrcp.f32 %v822_v44 }
 0x487   : > { %v1278_v45 = vpop.eup %1277 }
 0x488   : > { %v842_v46 = vmul.f32 %v1278_v45, %v1264_v19  ;;  %v825_v47 = vpop.xlane.xlu1 %824 }
 0x489   : > { %1283 = vrcp.f32 %v825_v47 }
 0x48a   : > { %1176 = vmatmul.mubr.msk.f32.vlgmr.msra.gmra.mrb[2].mxu0 %vm770_vm5, %v842_v46 }
 0x48b   : > { %v1280_v48 = vpop.eup %1279  ;;  %1178 = vmatprep.mubr.msk.f32.mxu0 %vm1300_vm0, %v1301_v52 }
 0x48c   : > { %v828_v49 = vpop.xlane.xlu0 %827  ;;  %v843_v53 = vmul.f32 %v1280_v48, %v1266_v24 }
 0x48d   : > { %1285 = vrcp.f32 %v828_v49 }
 0x48e   : > { %1179 = vmatmul.mubr.msk.f32.gmra.mrb[4].mxu0 %vm770_vm5, %v843_v53 }
 0x48f   : > { %v1282_v55 = vpop.eup %1281  ;;  %1181 = vmatprep.mubr.msk.f32.mxu0 %vm1300_vm0, %v1301_v52 }
 0x490   : > { %v831_v56 = vpop.xlane.xlu0 %830  ;;  %v844_v57 = vmul.f32 %v1282_v55, %v1268_v29 }
 0x491   : > { %1287 = vrcp.f32 %v831_v56 }
 0x492   : > { %1182 = vmatmul.mubr.msk.f32.gmra.mrb[6].mxu0 %vm770_vm5, %v844_v57 }
 0x493   : > { %v1284_v58 = vpop.eup %1283  ;;  %1184 = vmatprep.mubr.msk.f32.mxu0 %vm1300_vm0, %v1301_v52 }
 0x494   : > { %v845_v59 = vmul.f32 %v1284_v58, %v1270_v34 }
 0x495   : > { %v834_v60 = vpop.xlane.xlu0 %833 }
 0x496   : > { %1289 = vrcp.f32 %v834_v60  ;;  %1185 = vmatmul.mubr.msk.f32.gmra.mrb[8].mxu0 %vm770_vm5, %v845_v59 }
 0x497   : > { %v1286_v62 = vpop.eup %1285 }
 0x498   : > { %v846_v63 = vmul.f32 %v1286_v62, %v1272_v37 }
 0x49a   : > { %1188 = vmatmul.mubr.msk.f32.vlgmr.msra.gmra.mrb[14].mxu1 %vm770_vm5, %v846_v63 }
 0x49b   : > { %v1288_v4 = vpop.eup %1287  ;;  %1190 = vmatprep.mubr.msk.f32.mxu1 %vm1300_vm0, %v1301_v52 }
 0x49c   : > { %v847_v3 = vmul.f32 %v1288_v4, %v1274_v38 }
 0x49e   : > { %1191 = vmatmul.mubr.msk.f32.gmra.mrb[16].mxu1 %vm770_vm5, %v847_v3 }
 0x49f   : > { %1193 = vmatprep.mubr.msk.f32.mxu1 %vm1300_vm0, %v1301_v52 }
 0x4a0   : > { %v1290_v6 = vpop.eup %1289 }
 0x4a1   : > { %v848_v5 = vmul.f32 %v1290_v6, %v1276_v40 }
 0x4a3   : > { %1194 = vmatmul.mubr.msk.f32.gmra.mrb[18].mxu1 %vm770_vm5, %v848_v5 }
 0x55d   : > { %v936_v7 = vpop.f32.mrb[2].mxu0 }
 0x55e   : > { %970 = vst [vmem:[%s360_s14] sm:$0xff] %v936_v7  ;;  %v1177_v8 = vpop.f32.mrb[3].mxu0 }
 0x561   : > { %v941_v9 = vpop.f32.mrb[4].mxu0 }
 0x562   : > { %971 = vst [vmem:[%s360_s14 + $0x8] sm:$0xff] %v941_v9  ;;  %v1180_v12 = vpop.f32.mrb[5].mxu0 }
 0x565   : > { %v946_v13 = vpop.f32.mrb[6].mxu0 }
 0x566   : > { %972 = vst [vmem:[%s360_s14 + $0x10] sm:$0xff] %v946_v13  ;;  %v1183_v14 = vpop.f32.mrb[7].mxu0 }
 0x569   : > { %v951_v15 = vpop.f32.mrb[8].mxu0 }
 0x56a   : > { %973 = vst [vmem:[%s360_s14 + $0x18] sm:$0xff] %v951_v15  ;;  %v1186_v52 = vpop.f32.mrb[9].mxu0 }
 0x56d   : > { %v956_v16 = vpop.f32.mrb[14].mxu1 }
 0x56e   : > { %974 = vst [vmem:[%s360_s14 + $0x20] sm:$0xff] %v956_v16  ;;  %v1189_v17 = vpop.f32.mrb[15].mxu1 }
 0x571   : > { %v961_v10 = vpop.f32.mrb[16].mxu1 }
 0x572   : > { %975 = vst [vmem:[%s360_s14 + $0x28] sm:$0xff] %v961_v10  ;;  %v1192_v1 = vpop.f32.mrb[17].mxu1 }
 0x576   : > { %v966_v61 = vpop.f32.mrb[18].mxu1 }
 0x577   : > { %976 = vst [vmem:[%s360_s14 + $0x30] sm:$0x3] %v966_v61  ;;  %v1195_v51 = vpop.f32.mrb[19].mxu1 }
 0x578 PF: > { %s19_s30 = sadd.s32 1, %s1297_s30  }
 0x579   : > { %p16_p4 = scmp.ge.s32.totalorder %s19_s30, 4  }
 0x57b   :  { %18 = sbr.rel (!%p16_p4) target bundleno = 1 (0x1), region = 92 }

</bundles_post_ra>
